<compile_context>
chip_gen: v7x
topology: tpu7x:2x2x1
jax: 0.10.0
libtpu: 0.0.40
codegen_flags: <defaults>
</compile_context>

<pallas_src>
import functools

import jax
import jax.numpy as jnp
from jax.experimental import pallas as pl
from jax.experimental.pallas import tpu as pltpu

LANES = 128  # vreg lane width; padded hidden / patch dims and output lane width

# Row indices inside the packed small-parameter block.
_ROW_B_EMBED, _ROW_GAMMA, _ROW_BETA, _ROW_W_HEAD, _ROW_B_HEAD = 0, 1, 2, 3, 4


def _piqa_kernel(x_ref, we_ref, p_ref, o_ref, *, tokens_per_image,
                 images_per_step, hidden_real):
    S = tokens_per_image
    Bt = images_per_step

    # Patch embedding: (Bt*S, Pp) bf16 @ (Pp, Dp) bf16 -> f32 on the MXU.
    tok = jnp.dot(x_ref[...], we_ref[...], preferred_element_type=jnp.float32)
    tok = tok + p_ref[_ROW_B_EMBED:_ROW_B_EMBED + 1, :]   # pad lanes stay exactly 0

    # LayerNorm over the *real* hidden channels.  Padded lanes of `tok` are
    # exactly zero, so whole-lane sums divided by the real width are exact.
    inv_d = 1.0 / hidden_real
    mu = jnp.sum(tok, axis=-1, keepdims=True) * inv_d
    ex2 = jnp.sum(tok * tok, axis=-1, keepdims=True) * inv_d
    var = jnp.maximum(ex2 - mu * mu, 0.0)                 # clamp: no negative var
    tok = (tok - mu) * jax.lax.rsqrt(var + 1e-5)
    tok = (tok * p_ref[_ROW_GAMMA:_ROW_GAMMA + 1, :]
           + p_ref[_ROW_BETA:_ROW_BETA + 1, :])           # gamma/beta pad=0 -> pad lanes 0

    # Point head before the token mean (both are linear, so they commute):
    # per-token score is a cheap lane reduction; only a (Bt*S,1) column then
    # needs cross-sublane averaging.
    t = jnp.sum(tok * p_ref[_ROW_W_HEAD:_ROW_W_HEAD + 1, :],
                axis=-1, keepdims=True)                   # (Bt*S, 1)
    scores = jnp.mean(t.reshape(Bt, S), axis=1, keepdims=True)   # (Bt, 1)

    # Lane-dense store: per-image score broadcast across the 128 output lanes,
    # head bias (replicated across row _ROW_B_HEAD) added lane-wise.
    o_ref[...] = (jnp.broadcast_to(scores, o_ref.shape)
                  + p_ref[_ROW_B_HEAD:_ROW_B_HEAD + 1, :])


def referencefree_piqa_forward(images, params, *, patch_size=4,
                               images_per_step=None):
    """images: (B, C, H, W) float32 NCHW (PyTorch convention).  Returns (B, 1)."""
    B, C, H, W = images.shape
    ps = patch_size
    Sh, Sw = H // ps, W // ps
    S = Sh * Sw
    P = C * ps * ps
    D = params["w_embed"].shape[1]
    Dp = ((max(D, 1) + LANES - 1) // LANES) * LANES
    Pp = ((max(P, 1) + LANES - 1) // LANES) * LANES

    # Whole batch in a single grid step by default: single-TC parts (v5e/v6e)
    # gain nothing from a serial "parallel" axis, and one 256-row pass fully
    # feeds the MXU M dimension.  If a smaller step is requested, pad the batch.
    Bt = B if images_per_step is None else min(images_per_step, B)
    B_pad = ((B + Bt - 1) // Bt) * Bt
    G = B_pad // Bt

    # ---- host-side glue (tiny, one-time) ----------------------------------
    # Patch extraction == Conv2d(kernel=ps, stride=ps) unfolding, K padded to 128.
    # TODO(synk): fuse the NCHW->patch extraction into the kernel via strided
    # DMA / index_map over NHWC images so this transpose is not a separate
    # per-forward XLA op (it dominates wall clock at these tiny sizes).
    x = images.astype(jnp.bfloat16)
    patches = x.reshape(B, C, Sh, ps, Sw, ps).transpose(0, 2, 4, 1, 3, 5)
    patches = patches.reshape(B * S, P)
    patches = jnp.zeros((B_pad * S, Pp), jnp.bfloat16).at[:B * S, :P].set(patches)

    # Embedding weight: bf16 MXU operand, zero-padded to (Pp, Dp).
    w_embed = jnp.zeros((Pp, Dp), jnp.bfloat16).at[:P, :D].set(
        params["w_embed"].astype(jnp.bfloat16))

    # Pack the five small parameter vectors into ONE (8, Dp) f32 block so the
    # kernel gets one DMA / one BlockSpec instead of six tiny ones.
    # Invariant: pad lanes [D:Dp] of rows 0-3 MUST stay exactly zero (the
    # LN-over-padded-lanes trick relies on it).
    pk = jnp.zeros((8, Dp), jnp.float32)
    pk = pk.at[_ROW_B_EMBED, :D].set(jnp.asarray(params["b_embed"], jnp.float32))
    pk = pk.at[_ROW_GAMMA, :D].set(jnp.asarray(params["ln_gamma"], jnp.float32))
    pk = pk.at[_ROW_BETA, :D].set(jnp.asarray(params["ln_beta"], jnp.float32))
    pk = pk.at[_ROW_W_HEAD, :D].set(
        jnp.asarray(params["w_head"], jnp.float32).reshape(-1))
    pk = pk.at[_ROW_B_HEAD, :].set(
        jnp.asarray(params["b_head"], jnp.float32).reshape(()))  # lane-replicated

    kernel = functools.partial(
        _piqa_kernel, tokens_per_image=S, images_per_step=Bt, hidden_real=D)

    flops = 2 * (B_pad * S) * Pp * Dp + 12 * (B_pad * S) * Dp
    bytes_accessed = (patches.size * 2 + w_embed.size * 2 + pk.size * 4
                      + B_pad * LANES * 4)

    out = pl.pallas_call(
        kernel,
        out_shape=jax.ShapeDtypeStruct((B_pad, LANES), jnp.float32),
        grid_spec=pltpu.PrefetchScalarGridSpec(
            num_scalar_prefetch=0,
            grid=(G,),
            in_specs=[
                pl.BlockSpec((Bt * S, Pp), lambda g: (g, 0)),   # patches (bf16)
                pl.BlockSpec((Pp, Dp), lambda g: (0, 0)),       # W_embed (bf16)
                pl.BlockSpec((8, Dp), lambda g: (0, 0)),        # packed small params
            ],
            out_specs=pl.BlockSpec((Bt, LANES), lambda g: (g, 0)),
        ),
        compiler_params=pltpu.CompilerParams(
            dimension_semantics=("parallel",)),
        cost_estimate=pl.CostEstimate(
            flops=flops, transcendentals=B_pad * S,
            bytes_accessed=bytes_accessed),
    )(patches, w_embed, pk)

    return out[:B, :1]                                           # (B, 1)


def init_params(key, in_ch=3, patch_size=4, hidden_size=32):
    P = in_ch * patch_size * patch_size
    D = hidden_size
    k1, k2, k3 = jax.random.split(key, 3)
    return {
        "w_embed": jax.random.normal(k1, (P, D), jnp.float32) * 0.02,
        "b_embed": jnp.zeros((D,), jnp.float32),
        "ln_gamma": jnp.ones((D,), jnp.float32),
        "ln_beta": jnp.zeros((D,), jnp.float32),
        "w_head": jax.random.normal(k2, (D, 1), jnp.float32) * 0.02,
        "b_head": jax.random.normal(k3, (1,), jnp.float32) * 0.02,
    }


if __name__ == "__main__":
    key = jax.random.PRNGKey(0)
    kx, kp = jax.random.split(key)

    B, C, H, W = 16, 3, 16, 16         # small panorama-like inputs, NCHW
    hidden_size = 32
    patch_size = 4

    images = jax.random.normal(kx, (B, C, H, W), jnp.float32)
    params = init_params(kp, in_ch=C, patch_size=patch_size, hidden_size=hidden_size)

    out = referencefree_piqa_forward(images, params, patch_size=patch_size)
    out = jax.block_until_ready(out)

    # Pure-JAX reference (same bf16 operand rounding as the kernel's MXU matmul).
    ps = patch_size
    Sh, Sw = H // ps, W // ps
    S = Sh * Sw
    P = C * ps * ps
    patches = images.astype(jnp.bfloat16).reshape(B, C, Sh, ps, Sw, ps)
    patches = patches.transpose(0, 2, 4, 1, 3, 5).reshape(B, S, P).astype(jnp.float32)
    we = params["w_embed"].astype(jnp.bfloat16).astype(jnp.float32)
    tok = patches @ we + params["b_embed"][None, None, :]
    mu = tok.mean(-1, keepdims=True)
    var = ((tok - mu) ** 2).mean(-1, keepdims=True)
    tok = (tok - mu) * jax.lax.rsqrt(var + 1e-5) * params["ln_gamma"] + params["ln_beta"]
    feat = tok.mean(axis=1)                                      # (B, D)
    ref = feat @ params["w_head"] + params["b_head"][None, :]    # (B, 1)

    assert out.shape == (B, 1)
    assert jnp.allclose(out, ref, atol=2e-3, rtol=2e-3), (out, ref)
    print("KERNEL_OK")
</pallas_src>

<mosaic_0001>
module attributes {stable_mosaic.version = 11 : i64} {
  func.func @_piqa_kernel(%arg0: i32, %arg1: memref<256x128xbf16, #tpu.memory_space<vmem>>, %arg2: memref<128x128xbf16, #tpu.memory_space<vmem>>, %arg3: memref<8x128xf32, #tpu.memory_space<vmem>>, %arg4: memref<16x128xf32, #tpu.memory_space<vmem>>) attributes {dimension_semantics = [#tpu.dimension_semantics<parallel>], iteration_bounds = array<i64: 1>, scalar_prefetch = 0 : i64, scratch_operands = 0 : i64, tpu.core_type = #tpu.core_type<tc>, window_params = [{transform_indices = @transform_0, window_bounds = array<i64: 256, 128>}, {pipeline_mode = #tpu.pipeline_mode<synchronous>, transform_indices = @transform_1, window_bounds = array<i64: 128, 128>}, {pipeline_mode = #tpu.pipeline_mode<synchronous>, transform_indices = @transform_2, window_bounds = array<i64: 8, 128>}, {transform_indices = @transform_3, window_bounds = array<i64: 16, 128>}]} {
    %c0 = arith.constant 0 : index
    %c0_0 = arith.constant 0 : index
    %0 = vector.load %arg1[%c0, %c0_0] : memref<256x128xbf16, #tpu.memory_space<vmem>>, vector<256x128xbf16>
    %c0_1 = arith.constant 0 : index
    %c0_2 = arith.constant 0 : index
    %1 = vector.load %arg2[%c0_1, %c0_2] : memref<128x128xbf16, #tpu.memory_space<vmem>>, vector<128x128xbf16>
    %cst = arith.constant dense<0.000000e+00> : vector<256x128xf32>
    %2 = tpu.matmul %0, %1, %cst {dimension_numbers = #tpu.dot_dimension_numbers<[1], [0], [0], [1], [0, 0, 1, 1], [], []>} : vector<256x128xbf16>, vector<128x128xbf16>, vector<256x128xf32> -> vector<256x128xf32>
    %c0_3 = arith.constant 0 : index
    %c0_4 = arith.constant 0 : index
    %3 = vector.load %arg3[%c0_3, %c0_4] : memref<8x128xf32, #tpu.memory_space<vmem>>, vector<1x128xf32>
    %4 = vector.broadcast %3 : vector<1x128xf32> to vector<256x128xf32>
    %5 = arith.addf %2, %4 : vector<256x128xf32>
    %cst_5 = arith.constant dense<0.000000e+00> : vector<256xf32>
    %6 = vector.multi_reduction <add>, %5, %cst_5 [1] : vector<256x128xf32> to vector<256xf32>
    %7 = vector.shape_cast %6 : vector<256xf32> to vector<256x1xf32>
    %cst_6 = arith.constant 3.125000e-02 : f32
    %8 = vector.broadcast %cst_6 : f32 to vector<256x1xf32>
    %9 = arith.mulf %7, %8 : vector<256x1xf32>
    %10 = arith.mulf %5, %5 : vector<256x128xf32>
    %cst_7 = arith.constant dense<0.000000e+00> : vector<256xf32>
    %11 = vector.multi_reduction <add>, %10, %cst_7 [1] : vector<256x128xf32> to vector<256xf32>
    %12 = vector.shape_cast %11 : vector<256xf32> to vector<256x1xf32>
    %cst_8 = arith.constant 3.125000e-02 : f32
    %13 = vector.broadcast %cst_8 : f32 to vector<256x1xf32>
    %14 = arith.mulf %12, %13 : vector<256x1xf32>
    %15 = arith.mulf %9, %9 : vector<256x1xf32>
    %16 = arith.subf %14, %15 : vector<256x1xf32>
    %cst_9 = arith.constant 0.000000e+00 : f32
    %17 = vector.broadcast %cst_9 : f32 to vector<256x1xf32>
    %18 = arith.maximumf %16, %17 : vector<256x1xf32>
    %19 = vector.broadcast %9 : vector<256x1xf32> to vector<256x128xf32>
    %20 = arith.subf %5, %19 : vector<256x128xf32>
    %cst_10 = arith.constant 9.99999974E-6 : f32
    %21 = vector.broadcast %cst_10 : f32 to vector<256x1xf32>
    %22 = arith.addf %18, %21 : vector<256x1xf32>
    %23 = math.rsqrt %22 : vector<256x1xf32>
    %24 = vector.broadcast %23 : vector<256x1xf32> to vector<256x128xf32>
    %25 = arith.mulf %20, %24 : vector<256x128xf32>
    %c1 = arith.constant 1 : index
    %c0_11 = arith.constant 0 : index
    %26 = vector.load %arg3[%c1, %c0_11] : memref<8x128xf32, #tpu.memory_space<vmem>>, vector<1x128xf32>
    %27 = vector.broadcast %26 : vector<1x128xf32> to vector<256x128xf32>
    %28 = arith.mulf %25, %27 : vector<256x128xf32>
    %c2 = arith.constant 2 : index
    %c0_12 = arith.constant 0 : index
    %29 = vector.load %arg3[%c2, %c0_12] : memref<8x128xf32, #tpu.memory_space<vmem>>, vector<1x128xf32>
    %30 = vector.broadcast %29 : vector<1x128xf32> to vector<256x128xf32>
    %31 = arith.addf %28, %30 : vector<256x128xf32>
    %c3 = arith.constant 3 : index
    %c0_13 = arith.constant 0 : index
    %32 = vector.load %arg3[%c3, %c0_13] : memref<8x128xf32, #tpu.memory_space<vmem>>, vector<1x128xf32>
    %33 = vector.broadcast %32 : vector<1x128xf32> to vector<256x128xf32>
    %34 = arith.mulf %31, %33 : vector<256x128xf32>
    %cst_14 = arith.constant dense<0.000000e+00> : vector<256xf32>
    %35 = vector.multi_reduction <add>, %34, %cst_14 [1] : vector<256x128xf32> to vector<256xf32>
    %36 = vector.shape_cast %35 : vector<256xf32> to vector<256x1xf32>
    %37 = vector.shape_cast %36 : vector<256x1xf32> to vector<16x16xf32>
    %cst_15 = arith.constant dense<0.000000e+00> : vector<16xf32>
    %38 = vector.multi_reduction <add>, %37, %cst_15 [1] : vector<16x16xf32> to vector<16xf32>
    %39 = vector.shape_cast %38 : vector<16xf32> to vector<16x1xf32>
    %cst_16 = arith.constant 1.600000e+01 : f32
    %40 = vector.broadcast %cst_16 : f32 to vector<16x1xf32>
    %41 = arith.divf %39, %40 : vector<16x1xf32>
    %42 = vector.shape_cast %41 : vector<16x1xf32> to vector<16x1xf32>
    %43 = vector.broadcast %42 : vector<16x1xf32> to vector<16x128xf32>
    %c4 = arith.constant 4 : index
    %c0_17 = arith.constant 0 : index
    %44 = vector.load %arg3[%c4, %c0_17] : memref<8x128xf32, #tpu.memory_space<vmem>>, vector<1x128xf32>
    %45 = vector.broadcast %44 : vector<1x128xf32> to vector<16x128xf32>
    %46 = arith.addf %43, %45 : vector<16x128xf32>
    %c0_18 = arith.constant 0 : index
    %c0_19 = arith.constant 0 : index
    %47 = vector.load %arg4[%c0_18, %c0_19] : memref<16x128xf32, #tpu.memory_space<vmem>>, vector<16x128xf32>
    tpu.vector_store %arg4[%c0_18, %c0_19], %46 {strides = array<i32>} : memref<16x128xf32, #tpu.memory_space<vmem>>, vector<16x128xf32>,
    return
  }
  func.func @transform_0(%arg0: i32) -> (i32, i32) {
    %c0_i32 = arith.constant 0 : i32
    %c0_i32_0 = arith.constant 0 : i32
    return %arg0, %c0_i32 : i32, i32
  }
  func.func @transform_1(%arg0: i32) -> (i32, i32) {
    %c0_i32 = arith.constant 0 : i32
    %c0_i32_0 = arith.constant 0 : i32
    %c0_i32_1 = arith.constant 0 : i32
    return %c0_i32, %c0_i32_0 : i32, i32
  }
  func.func @transform_2(%arg0: i32) -> (i32, i32) {
    %c0_i32 = arith.constant 0 : i32
    %c0_i32_0 = arith.constant 0 : i32
    %c0_i32_1 = arith.constant 0 : i32
    return %c0_i32, %c0_i32_0 : i32, i32
  }
  func.func @transform_3(%arg0: i32) -> (i32, i32) {
    %c0_i32 = arith.constant 0 : i32
    %c0_i32_0 = arith.constant 0 : i32
    return %arg0, %c0_i32 : i32, i32
  }
}

</mosaic_0001>

<bundles_post_ra>
// kernel: tpu_custom_call.1
= control target key start
LH: loop header
LB: loop body
LE: loop exit
PB: predicated region body
PF: predicated region fallthrough
CT: control target
= control target key end

     0   :  { %8 = vsyncpa [#allocation3], 0  ;;  %s2270_s0 = inlined_call_operand.hbm [shape: bf16[256,128], index: 0, kind: input, shape index: {}]   ;;  %s2271_s1 = inlined_call_operand.hbm [shape: bf16[128,128], index: 1, kind: input, shape index: {}]   ;;  %s2272_s2 = inlined_call_operand.hbm [shape: f32[8,128], index: 2, kind: input, shape index: {}]   ;;  %s2273_s3 = inlined_call_operand.hbm [shape: f32[16,128], index: 3, kind: output, shape index: {}]  }
   0x1   :  { %9 = vsyncpa [#allocation6], 0 }
   0x2   :  { %10 = vsyncpa [#allocation4], 0  ;;  %s1583_s12 = smov [#allocation5]   ;;  %s1584_s14 = smov [#allocation2]  }
   0x3   :  { %s28_s13 = sshll.u32 %s1583_s12, 4  ;;  %s16_s15 = sshll.u32 %s1584_s14, 4  ;;  %s29_s13 = int_to_ptr.vmem [resolvable:$true] %s28_s13  ;;  %s1611_s15 = int_to_ptr.vmem [resolvable:$true] %s16_s15 }
   0x4   :  { %s1489_s18 = scalar_lea.hbm %s2271_s1, 1024 }
   0x5   :  { %p1490_p0 = scmp.ne.s32.totalorder %s2271_s1, %s1489_s18  ;;  %p1493_p1 = scmp.lt.u32.totalorder %s1489_s18, %s2271_s1 }
   0x7   :  { %p1495_p2 = pnand %p1493_p1, %p1490_p0 }
   0x9   :  { %1498 = shalt.err (!%p1495_p2)
}
   0xa   :  { %s1499_s23 = scalar_lea.vmem %s29_s13, 1024  ;;  %p1504_p4 = scmp.lt.s32.totalorder %s29_s13, %s29_s13 }
   0xb   :  { %p1500_p3 = scmp.ne.s32.totalorder %s29_s13, %s1499_s23  ;;  %p1505_p5 = scmp.lt.s32.totalorder %s1499_s23, %s1499_s23 }
   0xd   :  { %p1506_p6 = por %p1505_p5, %p1504_p4 }
   0xf   :  { %p1507_p7 = pnand %p1506_p6, %p1500_p3 }
  0x11   :  { %1510 = shalt.err (!%p1507_p7)
}
  0x12   :  { %s1585_s24 = smov 64   ;;  %s1586_s25 = smov 4  }
  0x13   :  { %34 = dma.hbm_to_vmem [thread:$0]  %s2271_s1, 1024, %s29_s13, [#allocation6], %s1585_s24, %s1585_s24, %s1586_s25  }
  0x14   :  { %s1511_s30 = scalar_lea.hbm %s2270_s0, 2048 }
  0x15   :  { %p1512_p8 = scmp.ne.s32.totalorder %s2270_s0, %s1511_s30  ;;  %p1515_p9 = scmp.lt.u32.totalorder %s1511_s30, %s2270_s0 }
  0x17   :  { %p1517_p10 = pnand %p1515_p9, %p1512_p8 }
  0x19   :  { %1520 = shalt.err (!%p1517_p10)
}
  0x1a   :  { %s1521_s8 = scalar_lea.vmem %s1611_s15, 2048  ;;  %p1526_p12 = scmp.lt.s32.totalorder %s1611_s15, %s1611_s15 }
  0x1b   :  { %p1522_p11 = scmp.ne.s32.totalorder %s1611_s15, %s1521_s8  ;;  %p1527_p13 = scmp.lt.s32.totalorder %s1521_s8, %s1521_s8 }
  0x1d   :  { %p1528_p0 = por %p1527_p13, %p1526_p12 }
  0x1f   :  { %p1529_p1 = pnand %p1528_p0, %p1522_p11 }
  0x21   :  { %1532 = shalt.err (!%p1529_p1)
}
  0x22   :  { %22 = dma.hbm_to_vmem [thread:$0]  %s2270_s0, 2048, %s1611_s15, [#allocation3], %s1585_s24, %s1585_s24, %s1586_s25  }
  0x23   :  { %s1587_s10 = smov [#allocation7]   ;;  %s1533_s14 = scalar_lea.hbm %s2272_s2, 128 }
  0x24   :  { %s41_s11 = sshll.u32 %s1587_s10, 4  ;;  %p1534_p2 = scmp.ne.s32.totalorder %s2272_s2, %s1533_s14  ;;  %s42_s11 = int_to_ptr.vmem [resolvable:$true] %s41_s11 }
  0x25   :  { %p1537_p3 = scmp.lt.u32.totalorder %s1533_s14, %s2272_s2 }
  0x27   :  { %p1539_p4 = pnand %p1537_p3, %p1534_p2 }
  0x29   :  { %1542 = shalt.err (!%p1539_p4)
}
  0x2a   :  { %s1543_s20 = scalar_lea.vmem %s42_s11, 128  ;;  %p1548_p6 = scmp.lt.s32.totalorder %s42_s11, %s42_s11 }
  0x2b   :  { %p1544_p5 = scmp.ne.s32.totalorder %s42_s11, %s1543_s20  ;;  %p1549_p7 = scmp.lt.s32.totalorder %s1543_s20, %s1543_s20 }
  0x2d   :  { %p1550_p8 = por %p1549_p7, %p1548_p6 }
  0x2f   :  { %p1551_p9 = pnand %p1550_p8, %p1544_p5 }
  0x31   :  { %1554 = shalt.err (!%p1551_p9)
}
  0x32   :  { %44 = dma.hbm_to_vmem [thread:$0]  %s2272_s2, 128, %s42_s11, [#allocation6]  }
  0x33   :  { %1577 = dma.done.wait [#allocation3], 2048  }
  0x34   :  { %1578 = vsyncadd [#allocation3], 4294965248 }
  0x35   :  { %1579 = dma.done.wait [#allocation6], 1152  }
  0x36   :  { %1580 = vsyncadd [#allocation6], 4294966144  ;;  %v1401_v0 = vld [vmem:[#allocation5] sm:$0xff]   ;;  %v1402_v1 = vld [vmem:[#allocation5 + $0x8] sm:$0xff]   ;;  %vm1079_vm0 = vcmask 130112   ;;  %vm1216_vm1 = vcmask 1041409  }
  0x37   :  { %1329 = vmatprep.subr.bf16.mxu0 %v1401_v0  ;;  %1377 = vmatprep.subr.bf16.mxu1 %v1401_v0  ;;  %v1403_v2 = vld [vmem:[#allocation5 + $0x10] sm:$0xff]   ;;  %v1404_v3 = vld [vmem:[#allocation5 + $0x18] sm:$0xff]   ;;  %v1409_v4 = vld [vmem:[#allocation2] sm:$0xff]   ;;  %vm1218_vm2 = vcmask 1042434   ;;  %vm1220_vm3 = vcmask 1043459   ;;  %vm1222_vm4 = vcmask 1044484  }
  0x38   :  { %1330 = vmatpush3.bf16.msra.mxu0 %v1401_v0  ;;  %1385 = vmatpush3.bf16.msra.mxu1 %v1401_v0  ;;  %v1410_v5 = vld [vmem:[#allocation2 + $0x40] sm:$0xff]   ;;  %v1406_v7 = vld [vmem:[#allocation5 + $0x28] sm:$0xff]   ;;  %v1407_v8 = vld [vmem:[#allocation5 + $0x30] sm:$0xff]   ;;  %vm1224_vm5 = vcmask 1045509   ;;  %vm1226_vm6 = vcmask 1046534   ;;  %vm1228_vm7 = vcmask 1047559  }
  0x39   :  { %1331 = vmatprep.subr.bf16.mxu0 %v1402_v1  ;;  %1378 = vmatprep.subr.bf16.mxu1 %v1402_v1  ;;  %v1405_v6 = vld [vmem:[#allocation5 + $0x20] sm:$0xff]   ;;  %v1408_v9 = vld [vmem:[#allocation5 + $0x38] sm:$0xff]   ;;  %v1411_v10 = vld [vmem:[#allocation2 + $0x8] sm:$0xff]   ;;  %vm1239_vm8 = vcmask 130048   ;;  %s1588_s2 = smov [#allocation8]  }
  0x3a   :  { %1345 = vmatprep.mubr.bf16.mxu0 %v1409_v4  ;;  %1361 = vmatprep.mubr.bf16.mxu1 %v1410_v5  ;;  %v1412_v11 = vld [vmem:[#allocation2 + $0x48] sm:$0xff]   ;;  %v1413_v12 = vld [vmem:[#allocation2 + $0x10] sm:$0xff]   ;;  %v1414_v14 = vld [vmem:[#allocation2 + $0x18] sm:$0xff]   ;;  %s1263_s21 = sshll.u32 %s1588_s2, 4  ;;  %s1264_s21 = int_to_ptr.vmem [resolvable:$true] %s1263_s21 }
  0x3b   :  { %v1415_v13 = vld [vmem:[#allocation2 + $0x50] sm:$0xff]   ;;  %v1416_v15 = vld [vmem:[#allocation2 + $0x58] sm:$0xff]   ;;  %v1417_v16 = vld [vmem:[#allocation2 + $0x20] sm:$0xff]   ;;  %s1555_s22 = scalar_lea.vmem %s1264_s21, 256  ;;  %p1560_p11 = scmp.lt.s32.totalorder %s1264_s21, %s1264_s21 }
  0x3c   :  { %1332 = vmatpush3.bf16.msra.mxu0 %v1402_v1  ;;  %1386 = vmatpush3.bf16.msra.mxu1 %v1402_v1  ;;  %v1419_v17 = vld [vmem:[#allocation2 + $0x60] sm:$0xff]   ;;  %v1418_v18 = vld [vmem:[#allocation2 + $0x28] sm:$0xff]   ;;  %v1421_v20 = vld [vmem:[#allocation2 + $0x30] sm:$0xff]   ;;  %p1556_p10 = scmp.ne.s32.totalorder %s1264_s21, %s1555_s22  ;;  %p1561_p12 = scmp.lt.s32.totalorder %s1555_s22, %s1555_s22 }
  0x3d   :  { %1333 = vmatprep.subr.bf16.mxu0 %v1403_v2  ;;  %1379 = vmatprep.subr.bf16.mxu1 %v1403_v2  ;;  %v1420_v19 = vld [vmem:[#allocation2 + $0x68] sm:$0xff]   ;;  %v1423_v21 = vld [vmem:[#allocation2 + $0x70] sm:$0xff]   ;;  %v1422_v22 = vld [vmem:[#allocation2 + $0x38] sm:$0xff]  }
  0x3e   :  { %v1424_v23 = vld [vmem:[#allocation2 + $0x78] sm:$0xff]   ;;  %v1654_v24 = vld [vmem:[#allocation7] ss:$0 sm:$0xff]  ;;  %p1562_p13 = por %p1561_p12, %p1560_p11 }
  0x40   :  { %1334 = vmatpush3.bf16.msra.mxu0 %v1403_v2  ;;  %1387 = vmatpush3.bf16.msra.mxu1 %v1403_v2  ;;  %p1563_p0 = pnand %p1562_p13, %p1556_p10 }
  0x41   :  { %1335 = vmatprep.subr.bf16.mxu0 %v1404_v3  ;;  %1380 = vmatprep.subr.bf16.mxu1 %v1404_v3 }
  0x44   :  { %1336 = vmatpush3.bf16.msra.mxu0 %v1404_v3  ;;  %1388 = vmatpush3.bf16.msra.mxu1 %v1404_v3 }
  0x45   :  { %1337 = vmatprep.subr.bf16.mxu0 %v1405_v6  ;;  %1381 = vmatprep.subr.bf16.mxu1 %v1405_v6 }
  0x48   :  { %1338 = vmatpush3.bf16.msra.mxu0 %v1405_v6  ;;  %1389 = vmatpush3.bf16.msra.mxu1 %v1405_v6 }
  0x49   :  { %1339 = vmatprep.subr.bf16.mxu0 %v1406_v7  ;;  %1382 = vmatprep.subr.bf16.mxu1 %v1406_v7 }
  0x4c   :  { %1340 = vmatpush3.bf16.msra.mxu0 %v1406_v7  ;;  %1390 = vmatpush3.bf16.msra.mxu1 %v1406_v7 }
  0x4d   :  { %1341 = vmatprep.subr.bf16.mxu0 %v1407_v8  ;;  %1383 = vmatprep.subr.bf16.mxu1 %v1407_v8 }
  0x50   :  { %1342 = vmatpush3.bf16.msra.mxu0 %v1407_v8  ;;  %1391 = vmatpush3.bf16.msra.mxu1 %v1407_v8 }
  0x51   :  { %1343 = vmatprep.subr.bf16.mxu0 %v1408_v9  ;;  %1384 = vmatprep.subr.bf16.mxu1 %v1408_v9 }
  0x54   :  { %1344 = vmatpush3.bf16.msra.mxu0 %v1408_v9  ;;  %1392 = vmatpush3.bf16.msra.mxu1 %v1408_v9 }
  0x57   :  { %1346 = vmatmul.mubr.bf16.vlgmr.msra.gmra.mrb[0].mxu0 %v1411_v10  ;;  %1362 = vmatmul.mubr.bf16.vlgmr.msra.gmra.mrb[0].mxu1 %v1412_v11 }
  0x58   :  { %1349 = vmatprep.mubr.bf16.mxu0 %v1413_v12  ;;  %1365 = vmatprep.mubr.bf16.mxu1 %v1415_v13 }
  0x5f   :  { %1350 = vmatmul.mubr.bf16.gmra.mrb[4].mxu0 %v1414_v14  ;;  %1366 = vmatmul.mubr.bf16.gmra.mrb[4].mxu1 %v1416_v15 }
  0x60   :  { %1353 = vmatprep.mubr.bf16.mxu0 %v1417_v16  ;;  %1369 = vmatprep.mubr.bf16.mxu1 %v1419_v17 }
  0x67   :  { %1354 = vmatmul.mubr.bf16.gmra.mrb[8].mxu0 %v1418_v18  ;;  %1370 = vmatmul.mubr.bf16.gmra.mrb[8].mxu1 %v1420_v19 }
  0x68   :  { %1357 = vmatprep.mubr.bf16.mxu0 %v1421_v20  ;;  %1373 = vmatprep.mubr.bf16.mxu1 %v1423_v21 }
  0x6f   :  { %1358 = vmatmul.mubr.bf16.gmra.mrb[12].mxu0 %v1422_v22  ;;  %1374 = vmatmul.mubr.bf16.gmra.mrb[12].mxu1 %v1424_v23 }
 0x12a   :  { %v1347_v25 = vpop.f32.mrb[0].mxu0  ;;  %v1363_v26 = vpop.f32.mrb[0].mxu1 }
 0x12b   :  { %v1657_v27 = vadd.f32 %v1347_v25, %v1654_v24  ;;  %v1660_v28 = vadd.f32 %v1363_v26, %v1654_v24  ;;  %v286_v29 = vpop.f32.mrb[1].mxu0  ;;  %v350_v30 = vpop.f32.mrb[1].mxu1 }
 0x12c   :  { %v1348_v31 = vpop.f32.mrb[2].mxu0  ;;  %v1364_v32 = vpop.f32.mrb[2].mxu1  ;;  %v1665_v35 = vadd.f32 %v1654_v24, %v286_v29  ;;  %v1677_v39 = vadd.f32 %v1654_v24, %v350_v30 }
 0x12d   :  { %449 = vadd.xlane.f32.xlu0 %v1660_v28  ;;  %v353_v33 = vpop.f32.mrb[3].mxu1  ;;  %417 = vadd.xlane.f32.xlu1 %v1657_v27  ;;  %v289_v34 = vpop.f32.mrb[3].mxu0  ;;  %v1668_v36 = vadd.f32 %v1348_v31, %v1654_v24  ;;  %v1680_v40 = vadd.f32 %v1364_v32, %v1654_v24  ;;  %v511_v48 = vmul.f32 %v1657_v27, %v1657_v27 }
 0x12e   :  { %v1693_v47 = vadd.f32 %v1654_v24, %v353_v33  ;;  %v527_v52 = vmul.f32 %v1660_v28, %v1660_v28  ;;  %v1727_v3 = vadd.f32 %v1654_v24, %v289_v34  ;;  %v509_v8 = vmul.f32 %v1665_v35, %v1665_v35 }
 0x12f   :  { %v512_v51 = vmul.f32 %v1668_v36, %v1668_v36  ;;  %v528_v4 = vmul.f32 %v1680_v40, %v1680_v40  ;;  %v525_v25 = vmul.f32 %v1677_v39, %v1677_v39 }
 0x130   :  { %v510_v7 = vmul.f32 %v1727_v3, %v1727_v3  ;;  %v526_v23 = vmul.f32 %v1693_v47, %v1693_v47 }
 0x131   :  { %419 = vadd.xlane.f32.xlu1 %v1668_v36  ;;  %413 = vadd.xlane.f32.xlu0 %v1665_v35 }
 0x132   :  { %v1672_v37 = vpop.f32.mrb[4].mxu0  ;;  %v1674_v38 = vpop.f32.mrb[4].mxu1 }
 0x133   :  { %v1682_v41 = vpop.f32.mrb[5].mxu0  ;;  %v1684_v42 = vpop.f32.mrb[5].mxu1  ;;  %v1766_v26 = vadd.f32 %v1672_v37, %v1654_v24  ;;  %v1775_v30 = vadd.f32 %v1674_v38, %v1654_v24 }
 0x134   :  { %v1352_v43 = vpop.f32.mrb[6].mxu0  ;;  %v1368_v44 = vpop.f32.mrb[6].mxu1  ;;  %v1784_v32 = vadd.f32 %v1654_v24, %v1682_v41  ;;  %v1794_v34 = vadd.f32 %v1654_v24, %v1684_v42 }
 0x135   :  { %451 = vadd.xlane.f32.xlu1 %v1680_v40  ;;  %445 = vadd.xlane.f32.xlu0 %v1677_v39  ;;  %v1688_v45 = vpop.f32.mrb[7].mxu0  ;;  %v1690_v46 = vpop.f32.mrb[7].mxu1  ;;  %v1769_v29 = vadd.f32 %v1352_v43, %v1654_v24  ;;  %v1778_v31 = vadd.f32 %v1368_v44, %v1654_v24  ;;  %v515_v41 = vmul.f32 %v1766_v26, %v1766_v26 }
 0x136   :  { %v1788_v33 = vadd.f32 %v1654_v24, %v1688_v45  ;;  %v1798_v37 = vadd.f32 %v1654_v24, %v1690_v46  ;;  %v531_v43 = vmul.f32 %v1775_v30, %v1775_v30  ;;  %v513_v44 = vmul.f32 %v1784_v32, %v1784_v32 }
 0x137   :  { %v516_v38 = vmul.f32 %v1769_v29, %v1769_v29  ;;  %v532_v42 = vmul.f32 %v1778_v31, %v1778_v31  ;;  %v529_v46 = vmul.f32 %v1794_v34, %v1794_v34 }
 0x138   :  { %v530_v45 = vmul.f32 %v1798_v37, %v1798_v37 }
 0x139   :  { %447 = vadd.xlane.f32.xlu1 %v1693_v47  ;;  %545 = vadd.xlane.f32.xlu0 %v511_v48 }
 0x13a   :  { %v1355_v49 = vpop.f32.mrb[8].mxu0  ;;  %v1371_v50 = vpop.f32.mrb[8].mxu1 }
 0x13b   :  { %v1703_v53 = vadd.f32 %v1355_v49, %v1654_v24  ;;  %v318_v54 = vpop.f32.mrb[9].mxu0  ;;  %v1706_v55 = vadd.f32 %v1371_v50, %v1654_v24  ;;  %v382_v56 = vpop.f32.mrb[9].mxu1 }
 0x13c   :  { %v1709_v57 = vadd.f32 %v1654_v24, %v318_v54  ;;  %v1356_v58 = vpop.f32.mrb[10].mxu0  ;;  %v1712_v59 = vadd.f32 %v1654_v24, %v382_v56  ;;  %v1372_v60 = vpop.f32.mrb[10].mxu1 }
 0x13d   :  { %547 = vadd.xlane.f32.xlu1 %v512_v51  ;;  %577 = vadd.xlane.f32.xlu0 %v527_v52  ;;  %v1715_v61 = vadd.f32 %v1356_v58, %v1654_v24  ;;  %v321_v62 = vpop.f32.mrb[11].mxu0  ;;  %v1718_v63 = vadd.f32 %v1372_v60, %v1654_v24  ;;  %v385_v0 = vpop.f32.mrb[11].mxu1  ;;  %v519_v49 = vmul.f32 %v1703_v53, %v1703_v53 }
 0x13e   :  { %v1721_v1 = vadd.f32 %v1654_v24, %v321_v62  ;;  %v1724_v2 = vadd.f32 %v1654_v24, %v385_v0  ;;  %v535_v51 = vmul.f32 %v1706_v55, %v1706_v55  ;;  %v517_v54 = vmul.f32 %v1709_v57, %v1709_v57 }
 0x13f   :  { %v520_v48 = vmul.f32 %v1715_v61, %v1715_v61  ;;  %v536_v50 = vmul.f32 %v1718_v63, %v1718_v63  ;;  %v533_v58 = vmul.f32 %v1712_v59, %v1712_v59 }
 0x140   :  { %v518_v52 = vmul.f32 %v1721_v1, %v1721_v1  ;;  %v534_v56 = vmul.f32 %v1724_v2, %v1724_v2 }
 0x141   :  { %579 = vadd.xlane.f32.xlu1 %v528_v4  ;;  %415 = vadd.xlane.f32.xlu0 %v1727_v3 }
 0x142   :  { %v1359_v5 = vpop.f32.mrb[12].mxu0  ;;  %v1375_v6 = vpop.f32.mrb[12].mxu1 }
 0x143   :  { %v1737_v9 = vadd.f32 %v1359_v5, %v1654_v24  ;;  %v334_v10 = vpop.f32.mrb[13].mxu0  ;;  %v1740_v11 = vadd.f32 %v1375_v6, %v1654_v24  ;;  %v398_v12 = vpop.f32.mrb[13].mxu1 }
 0x144   :  { %v1743_v13 = vadd.f32 %v1654_v24, %v334_v10  ;;  %v1360_v14 = vpop.f32.mrb[14].mxu0  ;;  %v1746_v15 = vadd.f32 %v1654_v24, %v398_v12  ;;  %v1376_v16 = vpop.f32.mrb[14].mxu1 }
 0x145   :  { %543 = vadd.xlane.f32.xlu1 %v510_v7  ;;  %541 = vadd.xlane.f32.xlu0 %v509_v8  ;;  %v1749_v17 = vadd.f32 %v1360_v14, %v1654_v24  ;;  %v337_v18 = vpop.f32.mrb[15].mxu0  ;;  %v1752_v19 = vadd.f32 %v1376_v16, %v1654_v24  ;;  %v401_v20 = vpop.f32.mrb[15].mxu1  ;;  %v523_v62 = vmul.f32 %v1737_v9, %v1737_v9 }
 0x146   :  { %v1755_v21 = vadd.f32 %v1654_v24, %v337_v18  ;;  %v1758_v22 = vadd.f32 %v1654_v24, %v401_v20  ;;  %v514_v24 = vmul.f32 %v1788_v33, %v1788_v33  ;;  %v521_v4 = vmul.f32 %v1743_v13, %v1743_v13 }
 0x147   :  { %v524_v60 = vmul.f32 %v1749_v17, %v1749_v17  ;;  %v537_v6 = vmul.f32 %v1746_v15, %v1746_v15  ;;  %v540_v7 = vmul.f32 %v1752_v19, %v1752_v19  ;;  %v539_v8 = vmul.f32 %v1740_v11, %v1740_v11 }
 0x148   :  { %v522_v0 = vmul.f32 %v1755_v21, %v1755_v21  ;;  %v538_v5 = vmul.f32 %v1758_v22, %v1758_v22 }
 0x149   :  { %575 = vadd.xlane.f32.xlu1 %v526_v23  ;;  %573 = vadd.xlane.f32.xlu0 %v525_v25 }
 0x14d   :  { %427 = vadd.xlane.f32.xlu1 %v1769_v29  ;;  %425 = vadd.xlane.f32.xlu0 %v1766_v26 }
 0x151   :  { %459 = vadd.xlane.f32.xlu1 %v1778_v31  ;;  %457 = vadd.xlane.f32.xlu0 %v1775_v30 }
 0x155   :  { %423 = vadd.xlane.f32.xlu1 %v1788_v33  ;;  %421 = vadd.xlane.f32.xlu0 %v1784_v32 }
 0x159   :  { %455 = vadd.xlane.f32.xlu1 %v1798_v37  ;;  %453 = vadd.xlane.f32.xlu0 %v1794_v34 }
 0x15d   :  { %555 = vadd.xlane.f32.xlu1 %v516_v38  ;;  %553 = vadd.xlane.f32.xlu0 %v515_v41 }
 0x161   :  { %587 = vadd.xlane.f32.xlu1 %v532_v42  ;;  %585 = vadd.xlane.f32.xlu0 %v531_v43 }
 0x165   :  { %551 = vadd.xlane.f32.xlu1 %v514_v24  ;;  %549 = vadd.xlane.f32.xlu0 %v513_v44 }
 0x169   :  { %583 = vadd.xlane.f32.xlu1 %v530_v45  ;;  %581 = vadd.xlane.f32.xlu0 %v529_v46 }
 0x16d   :  { %435 = vadd.xlane.f32.xlu1 %v1715_v61  ;;  %433 = vadd.xlane.f32.xlu0 %v1703_v53 }
 0x171   :  { %467 = vadd.xlane.f32.xlu1 %v1718_v63  ;;  %465 = vadd.xlane.f32.xlu0 %v1706_v55 }
 0x175   :  { %431 = vadd.xlane.f32.xlu1 %v1721_v1  ;;  %429 = vadd.xlane.f32.xlu0 %v1709_v57 }
 0x179   :  { %463 = vadd.xlane.f32.xlu1 %v1724_v2  ;;  %461 = vadd.xlane.f32.xlu0 %v1712_v59 }
 0x17d   :  { %563 = vadd.xlane.f32.xlu1 %v520_v48  ;;  %561 = vadd.xlane.f32.xlu0 %v519_v49 }
 0x181   :  { %595 = vadd.xlane.f32.xlu1 %v536_v50  ;;  %593 = vadd.xlane.f32.xlu0 %v535_v51 }
 0x185   :  { %559 = vadd.xlane.f32.xlu1 %v518_v52  ;;  %557 = vadd.xlane.f32.xlu0 %v517_v54 }
 0x189   :  { %591 = vadd.xlane.f32.xlu1 %v534_v56  ;;  %589 = vadd.xlane.f32.xlu0 %v533_v58 }
 0x18d   :  { %443 = vadd.xlane.f32.xlu1 %v1749_v17  ;;  %441 = vadd.xlane.f32.xlu0 %v1737_v9 }
 0x191   :  { %475 = vadd.xlane.f32.xlu1 %v1752_v19  ;;  %473 = vadd.xlane.f32.xlu0 %v1740_v11 }
 0x195   :  { %439 = vadd.xlane.f32.xlu1 %v1755_v21  ;;  %437 = vadd.xlane.f32.xlu0 %v1743_v13 }
 0x199   :  { %471 = vadd.xlane.f32.xlu1 %v1758_v22  ;;  %469 = vadd.xlane.f32.xlu0 %v1746_v15 }
 0x19d   :  { %571 = vadd.xlane.f32.xlu1 %v524_v60  ;;  %569 = vadd.xlane.f32.xlu0 %v523_v62 }
 0x1a1   :  { %567 = vadd.xlane.f32.xlu1 %v522_v0  ;;  %565 = vadd.xlane.f32.xlu0 %v521_v4 }
 0x1a5   :  { %599 = vadd.xlane.f32.xlu1 %v538_v5  ;;  %597 = vadd.xlane.f32.xlu0 %v537_v6 }
 0x1a9   :  { %603 = vadd.xlane.f32.xlu1 %v540_v7  ;;  %601 = vadd.xlane.f32.xlu0 %v539_v8 }
 0x1ba   :  { %v450_v10 = vpop.xlane.xlu0 %449  ;;  %v418_v12 = vpop.xlane.xlu1 %417 }
 0x1bb   :  { %v1866_v23 = vmul.f32 0.03125, %v418_v12  ;;  %v1868_v25 = vmul.f32 0.03125, %v450_v10 }
 0x1bd   :  { %v639_v42 = vmul.f32 %v1866_v23, %v1866_v23  ;;  %v655_v45 = vmul.f32 %v1868_v25, %v1868_v25 }
 0x1be   :  { %v420_v14 = vpop.xlane.xlu1 %419  ;;  %v414_v16 = vpop.xlane.xlu0 %413 }
 0x1bf   :  { %v1872_v43 = vmul.f32 0.03125, %v420_v14  ;;  %v1880_v62 = vmul.f32 0.03125, %v414_v16 }
 0x1c1   :  { %v640_v50 = vmul.f32 %v1872_v43, %v1872_v43 }
 0x1c2   :  { %v452_v18 = vpop.xlane.xlu1 %451  ;;  %v446_v20 = vpop.xlane.xlu0 %445 }
 0x1c3   :  { %v1876_v46 = vmul.f32 0.03125, %v452_v18 }
 0x1c5   :  { %v656_v0 = vmul.f32 %v1876_v46, %v1876_v46 }
 0x1c6   :  { %v448_v38 = vpop.xlane.xlu1 %447  ;;  %v546_v41 = vpop.xlane.xlu0 %545 }
 0x1c7   :  { %v607_v24 = vmul.f32 0.03125, %v546_v41  ;;  %v637_v41 = vmul.f32 %v1880_v62, %v1880_v62 }
 0x1c9   :  { %v671_v44 = vsub.f32 %v607_v24, %v639_v42  ;;  %v1888_v42 = vmul.f32 0.03125, %v448_v38 }
 0x1ca   :  { %v548_v48 = vpop.xlane.xlu1 %547  ;;  %v578_v49 = vpop.xlane.xlu0 %577 }
 0x1cb   :  { %v703_v51 = vmax.f32 %v671_v44, 0.0  ;;  %v608_v52 = vmul.f32 0.03125, %v548_v48  ;;  %v623_v54 = vmul.f32 0.03125, %v578_v49 }
 0x1cd   :  { %v767_v56 = vadd.f32 1e-05, %v703_v51  ;;  %v672_v58 = vsub.f32 %v608_v52, %v640_v50  ;;  %v687_v60 = vsub.f32 %v623_v54, %v655_v45  ;;  %v1892_v50 = vmul.f32 0.03125, %v446_v20 }
 0x1ce   :  { %v580_v4 = vpop.xlane.xlu1 %579  ;;  %v416_v5 = vpop.xlane.xlu0 %415 }
 0x1cf   :  { %1425 = vrsqrt.f32 %v767_v56  ;;  %v704_v6 = vmax.f32 %v672_v58, 0.0  ;;  %v719_v7 = vmax.f32 %v687_v60, 0.0  ;;  %v624_v8 = vmul.f32 0.03125, %v580_v4 }
 0x1d0   :  { %v1884_v10 = vmul.f32 0.03125, %v416_v5  ;;  %v654_v56 = vmul.f32 %v1888_v42, %v1888_v42  ;;  %v735_v5 = vsub.f32 %v1657_v27, %v1866_v23  ;;  %v653_v20 = vmul.f32 %v1892_v50, %v1892_v50 }
 0x1d1   :  { %v768_v12 = vadd.f32 1e-05, %v704_v6  ;;  %v783_v14 = vadd.f32 1e-05, %v719_v7  ;;  %v688_v18 = vsub.f32 %v624_v8, %v656_v0  ;;  %v736_v27 = vsub.f32 %v1668_v36, %v1872_v43 }
 0x1d2   :  { %v638_v16 = vmul.f32 %v1884_v10, %v1884_v10  ;;  %v544_v24 = vpop.xlane.xlu1 %543  ;;  %v542_v44 = vpop.xlane.xlu0 %541  ;;  %v752_v43 = vsub.f32 %v1680_v40, %v1876_v46 }
 0x1d3   :  { %1427 = vrsqrt.f32 %v768_v12  ;;  %v720_v45 = vmax.f32 %v688_v18, 0.0  ;;  %v606_v48 = vmul.f32 0.03125, %v544_v24  ;;  %v605_v49 = vmul.f32 0.03125, %v542_v44  ;;  %v1900_v18 = vld [vmem:[#allocation7 + $0x1] ss:$0 sm:$0xff] }
 0x1d4   :  { %1429 = vrsqrt.f32 %v783_v14 }
 0x1d5   :  { %v784_v51 = vadd.f32 1e-05, %v720_v45  ;;  %v670_v52 = vsub.f32 %v606_v48, %v638_v16  ;;  %v669_v54 = vsub.f32 %v605_v49, %v637_v41  ;;  %v1902_v48 = vld [vmem:[#allocation7 + $0x2] ss:$0 sm:$0xff] }
 0x1d6   :  { %v576_v38 = vpop.xlane.xlu1 %575  ;;  %v574_v58 = vpop.xlane.xlu0 %573 }
 0x1d7   :  { %1431 = vrsqrt.f32 %v784_v51  ;;  %v702_v60 = vmax.f32 %v670_v52, 0.0  ;;  %v701_v0 = vmax.f32 %v669_v54, 0.0  ;;  %v622_v4 = vmul.f32 0.03125, %v576_v38 }
 0x1d8   :  { %v621_v6 = vmul.f32 0.03125, %v574_v58  ;;  %v751_v52 = vsub.f32 %v1660_v28, %v1868_v25 }
 0x1d9   :  { %v1426_v7 = vpop.eup %1425  ;;  %v766_v8 = vadd.f32 1e-05, %v702_v60  ;;  %v765_v12 = vadd.f32 1e-05, %v701_v0  ;;  %v686_v14 = vsub.f32 %v622_v4, %v654_v56  ;;  %v1909_v56 = vld [vmem:[#allocation7 + $0x3] ss:$0 sm:$0xff] }
 0x1da   :  { %v685_v41 = vsub.f32 %v621_v6, %v653_v20  ;;  %v428_v16 = vpop.xlane.xlu1 %427  ;;  %v426_v24 = vpop.xlane.xlu0 %425  ;;  %v831_v44 = vmul.f32 %v1426_v7, %v735_v5 }
 0x1db   :  { %1433 = vrsqrt.f32 %v766_v8  ;;  %v718_v45 = vmax.f32 %v686_v14, 0.0 }
 0x1dc   :  { %1435 = vrsqrt.f32 %v765_v12  ;;  %v717_v23 = vmax.f32 %v685_v41, 0.0  ;;  %v868_v49 = vmul.f32 %v1900_v18, %v831_v44  ;;  %v734_v41 = vsub.f32 %v1727_v3, %v1884_v10 }
 0x1dd   :  { %v1428_v51 = vpop.eup %1427  ;;  %v782_v54 = vadd.f32 1e-05, %v718_v45 }
 0x1de   :  { %v1430_v38 = vpop.eup %1429  ;;  %v781_v58 = vadd.f32 1e-05, %v717_v23  ;;  %v460_v60 = vpop.xlane.xlu1 %459  ;;  %v905_v4 = vadd.f32 %v1902_v48, %v868_v49  ;;  %v832_v5 = vmul.f32 %v1428_v51, %v736_v27  ;;  %v733_v27 = vsub.f32 %v1665_v35, %v1880_v62 }
 0x1df   :  { %v458_v0 = vpop.xlane.xlu0 %457  ;;  %1437 = vrsqrt.f32 %v782_v54  ;;  %v847_v36 = vmul.f32 %v1430_v38, %v751_v52  ;;  %v1925_v23 = vmul.f32 0.03125, %v428_v16  ;;  %v1929_v38 = vmul.f32 0.03125, %v426_v24 }
 0x1e0   :  { %1439 = vrsqrt.f32 %v781_v58  ;;  %v942_v20 = vmul.f32 %v1909_v56, %v905_v4  ;;  %v869_v28 = vmul.f32 %v1900_v18, %v832_v5  ;;  %v750_v4 = vsub.f32 %v1693_v47, %v1888_v42 }
 0x1e1   :  { %v1432_v25 = vpop.eup %1431  ;;  %v884_v12 = vmul.f32 %v1900_v18, %v847_v36  ;;  %v749_v5 = vsub.f32 %v1677_v39, %v1892_v50  ;;  %v644_v36 = vmul.f32 %v1925_v23, %v1925_v23 }
 0x1e2   :  { %v424_v6 = vpop.xlane.xlu1 %423  ;;  %976 = vadd.xlane.f32.xlu0 %v942_v20  ;;  %v906_v8 = vadd.f32 %v1902_v48, %v869_v28  ;;  %v848_v14 = vmul.f32 %v1432_v25, %v752_v43  ;;  %v1939_v43 = vmul.f32 0.03125, %v460_v60  ;;  %v1941_v20 = vmul.f32 0.03125, %v458_v0 }
 0x1e3   :  { %v422_v7 = vpop.xlane.xlu0 %421  ;;  %v921_v40 = vadd.f32 %v1902_v48, %v884_v12  ;;  %v643_v12 = vmul.f32 %v1929_v38, %v1929_v38 }
 0x1e4   :  { %v943_v44 = vmul.f32 %v1909_v56, %v906_v8  ;;  %v885_v46 = vmul.f32 %v1900_v18, %v848_v14 }
 0x1e5   :  { %v1434_v45 = vpop.eup %1433  ;;  %v958_v52 = vmul.f32 %v1909_v56, %v921_v40 }
 0x1e6   :  { %v1436_v49 = vpop.eup %1435  ;;  %978 = vadd.xlane.f32.xlu1 %v943_v44  ;;  %v456_v51 = vpop.xlane.xlu1 %455  ;;  %v922_v3 = vadd.f32 %v1902_v48, %v885_v46  ;;  %v830_v10 = vmul.f32 %v1434_v45, %v734_v41  ;;  %v660_v44 = vmul.f32 %v1939_v43, %v1939_v43 }
 0x1e7   :  { %v454_v54 = vpop.xlane.xlu0 %453  ;;  %v829_v58 = vmul.f32 %v1436_v49, %v733_v27  ;;  %1008 = vadd.xlane.f32.xlu0 %v958_v52  ;;  %v659_v27 = vmul.f32 %v1941_v20, %v1941_v20  ;;  %v1955_v49 = vmul.f32 0.03125, %v424_v6 }
 0x1e8   :  { %v959_v35 = vmul.f32 %v1909_v56, %v922_v3  ;;  %v867_v62 = vmul.f32 %v1900_v18, %v830_v10 }
 0x1e9   :  { %v1438_v16 = vpop.eup %1437  ;;  %v866_v25 = vmul.f32 %v1900_v18, %v829_v58 }
 0x1ea   :  { %v1440_v24 = vpop.eup %1439  ;;  %1010 = vadd.xlane.f32.xlu1 %v959_v35  ;;  %v556_v28 = vpop.xlane.xlu1 %555  ;;  %v904_v42 = vadd.f32 %v1902_v48, %v867_v62  ;;  %v846_v8 = vmul.f32 %v1438_v16, %v750_v4 }
 0x1eb   :  { %v554_v47 = vpop.xlane.xlu0 %553  ;;  %v612_v39 = vmul.f32 0.03125, %v556_v28  ;;  %v845_v14 = vmul.f32 %v1440_v24, %v749_v5  ;;  %v903_v41 = vadd.f32 %v1902_v48, %v866_v25  ;;  %v1959_v5 = vmul.f32 0.03125, %v422_v7 }
 0x1ec   :  { %v611_v50 = vmul.f32 0.03125, %v554_v47  ;;  %v941_v60 = vmul.f32 %v1909_v56, %v904_v42  ;;  %v883_v0 = vmul.f32 %v1900_v18, %v846_v8  ;;  %v642_v25 = vmul.f32 %v1955_v49, %v1955_v49 }
 0x1ed   :  { %v676_v40 = vsub.f32 %v612_v39, %v644_v36  ;;  %v882_v45 = vmul.f32 %v1900_v18, %v845_v14  ;;  %v940_v3 = vmul.f32 %v1909_v56, %v903_v41  ;;  %v1965_v8 = vmul.f32 0.03125, %v456_v51 }
 0x1ee   :  { %v675_v46 = vsub.f32 %v611_v50, %v643_v12  ;;  %v588_v52 = vpop.xlane.xlu1 %587  ;;  %974 = vadd.xlane.f32.xlu1 %v941_v60  ;;  %v920_v58 = vadd.f32 %v1902_v48, %v883_v0  ;;  %v1967_v12 = vmul.f32 0.03125, %v454_v54  ;;  %v641_v0 = vmul.f32 %v1959_v5, %v1959_v5 }
 0x1ef   :  { %v586_v10 = vpop.xlane.xlu0 %585  ;;  %v708_v4 = vmax.f32 %v676_v40, 0.0  ;;  %v628_v62 = vmul.f32 0.03125, %v588_v52  ;;  %972 = vadd.xlane.f32.xlu0 %v940_v3  ;;  %v919_v24 = vadd.f32 %v1902_v48, %v882_v45  ;;  %v658_v54 = vmul.f32 %v1965_v8, %v1965_v8 }
 0x1f0   :  { %v707_v35 = vmax.f32 %v675_v46, 0.0  ;;  %v627_v16 = vmul.f32 0.03125, %v586_v10  ;;  %v957_v36 = vmul.f32 %v1909_v56, %v920_v58  ;;  %v657_v45 = vmul.f32 %v1967_v12, %v1967_v12 }
 0x1f1   :  { %v772_v6 = vadd.f32 1e-05, %v708_v4  ;;  %v692_v47 = vsub.f32 %v628_v62, %v660_v44  ;;  %v956_v7 = vmul.f32 %v1909_v56, %v919_v24 }
 0x1f2   :  { %v771_v28 = vadd.f32 1e-05, %v707_v35  ;;  %v691_v42 = vsub.f32 %v627_v16, %v659_v27  ;;  %v552_v39 = vpop.xlane.xlu1 %551  ;;  %1006 = vadd.xlane.f32.xlu1 %v957_v36 }
 0x1f3   :  { %v550_v50 = vpop.xlane.xlu0 %549  ;;  %1441 = vrsqrt.f32 %v772_v6  ;;  %v724_v14 = vmax.f32 %v692_v47, 0.0  ;;  %v610_v41 = vmul.f32 0.03125, %v552_v39  ;;  %1004 = vadd.xlane.f32.xlu0 %v956_v7  ;;  %v739_v7 = vsub.f32 %v1766_v26, %v1929_v38 }
 0x1f4   :  { %v723_v60 = vmax.f32 %v691_v42, 0.0  ;;  %1443 = vrsqrt.f32 %v771_v28  ;;  %v609_v44 = vmul.f32 0.03125, %v550_v50 }
 0x1f5   :  { %v788_v40 = vadd.f32 1e-05, %v724_v14  ;;  %v674_v46 = vsub.f32 %v610_v41, %v642_v25  ;;  %v740_v25 = vsub.f32 %v1769_v29, %v1925_v23  ;;  %v755_v23 = vsub.f32 %v1775_v30, %v1941_v20 }
 0x1f6   :  { %v787_v51 = vadd.f32 1e-05, %v723_v60  ;;  %v673_v27 = vsub.f32 %v609_v44, %v641_v0  ;;  %v584_v52 = vpop.xlane.xlu1 %583  ;;  %v737_v30 = vsub.f32 %v1784_v32, %v1959_v5 }
 0x1f7   :  { %v582_v3 = vpop.xlane.xlu0 %581  ;;  %1445 = vrsqrt.f32 %v788_v40  ;;  %v706_v10 = vmax.f32 %v674_v46, 0.0  ;;  %v626_v58 = vmul.f32 0.03125, %v584_v52 }
 0x1f8   :  { %v625_v4 = vmul.f32 0.03125, %v582_v3  ;;  %1447 = vrsqrt.f32 %v787_v51  ;;  %v705_v35 = vmax.f32 %v673_v27, 0.0  ;;  %v756_v51 = vsub.f32 %v1778_v31, %v1939_v43 }
 0x1f9   :  { %v770_v62 = vadd.f32 1e-05, %v706_v10  ;;  %v690_v16 = vsub.f32 %v626_v58, %v658_v54  ;;  %v738_v10 = vsub.f32 %v1788_v33, %v1955_v49 }
 0x1fa   :  { %v689_v36 = vsub.f32 %v625_v4, %v657_v45  ;;  %v769_v24 = vadd.f32 1e-05, %v705_v35  ;;  %v436_v6 = vpop.xlane.xlu1 %435 }
 0x1fb   :  { %v434_v28 = vpop.xlane.xlu0 %433  ;;  %1449 = vrsqrt.f32 %v770_v62  ;;  %v722_v47 = vmax.f32 %v690_v16, 0.0  ;;  %v1994_v20 = vmul.f32 0.03125, %v436_v6 }
 0x1fc   :  { %v721_v42 = vmax.f32 %v689_v36, 0.0  ;;  %1451 = vrsqrt.f32 %v769_v24 }
 0x1fd   :  { %v1442_v39 = vpop.eup %1441  ;;  %v786_v50 = vadd.f32 1e-05, %v722_v47  ;;  %v1999_v47 = vmul.f32 0.03125, %v434_v28 }
 0x1fe   :  { %v785_v14 = vadd.f32 1e-05, %v721_v42  ;;  %v1444_v60 = vpop.eup %1443  ;;  %v468_v41 = vpop.xlane.xlu1 %467  ;;  %v836_v44 = vmul.f32 %v1442_v39, %v740_v25  ;;  %v754_v25 = vsub.f32 %v1798_v37, %v1965_v8 }
 0x1ff   :  { %v466_v0 = vpop.xlane.xlu0 %465  ;;  %1453 = vrsqrt.f32 %v786_v50  ;;  %v835_v40 = vmul.f32 %v1444_v60, %v739_v7  ;;  %v753_v7 = vsub.f32 %v1794_v34, %v1967_v12  ;;  %v648_v50 = vmul.f32 %v1994_v20, %v1994_v20 }
 0x200   :  { %1455 = vrsqrt.f32 %v785_v14  ;;  %v873_v46 = vmul.f32 %v1900_v18, %v836_v44  ;;  %v2010_v28 = vmul.f32 0.03125, %v468_v41  ;;  %v2012_v14 = vmul.f32 0.03125, %v466_v0 }
 0x201   :  { %v1446_v29 = vpop.eup %1445  ;;  %v872_v27 = vmul.f32 %v1900_v18, %v835_v40  ;;  %v647_v34 = vmul.f32 %v1999_v47, %v1999_v47 }
 0x202   :  { %v1448_v54 = vpop.eup %1447  ;;  %v432_v26 = vpop.xlane.xlu1 %431  ;;  %v910_v45 = vadd.f32 %v1902_v48, %v873_v46  ;;  %v852_v52 = vmul.f32 %v1446_v29, %v756_v51 }
 0x203   :  { %v430_v38 = vpop.xlane.xlu0 %429  ;;  %v851_v3 = vmul.f32 %v1448_v54, %v755_v23  ;;  %v909_v43 = vadd.f32 %v1902_v48, %v872_v27 }
 0x204   :  { %v947_v31 = vmul.f32 %v1909_v56, %v910_v45  ;;  %v889_v58 = vmul.f32 %v1900_v18, %v852_v52  ;;  %v664_v45 = vmul.f32 %v2010_v28, %v2010_v28 }
 0x205   :  { %v1450_v4 = vpop.eup %1449  ;;  %v946_v16 = vmul.f32 %v1909_v56, %v909_v43  ;;  %v888_v49 = vmul.f32 %v1900_v18, %v851_v3 }
 0x206   :  { %v1452_v35 = vpop.eup %1451  ;;  %v464_v62 = vpop.xlane.xlu1 %463  ;;  %986 = vadd.xlane.f32.xlu1 %v947_v31  ;;  %v926_v33 = vadd.f32 %v1902_v48, %v889_v58  ;;  %v834_v24 = vmul.f32 %v1450_v4, %v738_v10  ;;  %v663_v10 = vmul.f32 %v2012_v14, %v2012_v14  ;;  %v2027_v31 = vmul.f32 0.03125, %v432_v26 }
 0x207   :  { %v462_v36 = vpop.xlane.xlu0 %461  ;;  %v833_v42 = vmul.f32 %v1452_v35, %v737_v30  ;;  %984 = vadd.xlane.f32.xlu0 %v946_v16  ;;  %v925_v5 = vadd.f32 %v1902_v48, %v888_v49 }
 0x208   :  { %v963_v32 = vmul.f32 %v1909_v56, %v926_v33  ;;  %v871_v6 = vmul.f32 %v1900_v18, %v834_v24  ;;  %v2031_v24 = vmul.f32 0.03125, %v430_v38 }
 0x209   :  { %v1454_v39 = vpop.eup %1453  ;;  %v962_v8 = vmul.f32 %v1909_v56, %v925_v5  ;;  %v870_v51 = vmul.f32 %v1900_v18, %v833_v42 }
 0x20a   :  { %v1456_v60 = vpop.eup %1455  ;;  %v564_v37 = vpop.xlane.xlu1 %563  ;;  %1018 = vadd.xlane.f32.xlu1 %v963_v32  ;;  %v908_v40 = vadd.f32 %v1902_v48, %v871_v6  ;;  %v850_v46 = vmul.f32 %v1454_v39, %v754_v25  ;;  %v646_v39 = vmul.f32 %v2027_v31, %v2027_v31 }
 0x20b   :  { %v562_v44 = vpop.xlane.xlu0 %561  ;;  %v616_v12 = vmul.f32 0.03125, %v564_v37  ;;  %v849_v41 = vmul.f32 %v1456_v60, %v753_v7  ;;  %1016 = vadd.xlane.f32.xlu0 %v962_v8  ;;  %v907_v23 = vadd.f32 %v1902_v48, %v870_v51  ;;  %v2037_v7 = vmul.f32 0.03125, %v464_v62 }
 0x20c   :  { %v615_v29 = vmul.f32 0.03125, %v562_v44  ;;  %v945_v0 = vmul.f32 %v1909_v56, %v908_v40  ;;  %v887_v54 = vmul.f32 %v1900_v18, %v850_v46  ;;  %v645_v51 = vmul.f32 %v2031_v24, %v2031_v24 }
 0x20d   :  { %v680_v27 = vsub.f32 %v616_v12, %v648_v50  ;;  %v886_v3 = vmul.f32 %v1900_v18, %v849_v41  ;;  %v944_v58 = vmul.f32 %v1909_v56, %v907_v23  ;;  %v2039_v50 = vmul.f32 0.03125, %v462_v36 }
 0x20e   :  { %v679_v52 = vsub.f32 %v615_v29, %v647_v34  ;;  %v596_v43 = vpop.xlane.xlu1 %595  ;;  %982 = vadd.xlane.f32.xlu1 %v945_v0  ;;  %v924_v30 = vadd.f32 %v1902_v48, %v887_v54  ;;  %v662_v36 = vmul.f32 %v2037_v7, %v2037_v7 }
 0x20f   :  { %v594_v4 = vpop.xlane.xlu0 %593  ;;  %v712_v35 = vmax.f32 %v680_v27, 0.0  ;;  %v632_v33 = vmul.f32 0.03125, %v596_v43  ;;  %980 = vadd.xlane.f32.xlu0 %v944_v58  ;;  %v923_v25 = vadd.f32 %v1902_v48, %v886_v3  ;;  %v661_v29 = vmul.f32 %v2039_v50, %v2039_v50 }
 0x210   :  { %v711_v16 = vmax.f32 %v679_v52, 0.0  ;;  %v631_v49 = vmul.f32 0.03125, %v594_v4  ;;  %v961_v42 = vmul.f32 %v1909_v56, %v924_v30 }
 0x211   :  { %v776_v26 = vadd.f32 1e-05, %v712_v35  ;;  %v696_v5 = vsub.f32 %v632_v33, %v664_v45  ;;  %v960_v38 = vmul.f32 %v1909_v56, %v923_v25  ;;  %v744_v33 = vsub.f32 %v1715_v61, %v1994_v20 }
 0x212   :  { %v775_v32 = vadd.f32 1e-05, %v711_v16  ;;  %v695_v6 = vsub.f32 %v631_v49, %v663_v10  ;;  %v560_v60 = vpop.xlane.xlu1 %559  ;;  %1014 = vadd.xlane.f32.xlu1 %v961_v42  ;;  %v743_v42 = vsub.f32 %v1703_v53, %v1999_v47  ;;  %v759_v53 = vsub.f32 %v1706_v55, %v2012_v14 }
 0x213   :  { %v558_v37 = vpop.xlane.xlu0 %557  ;;  %1457 = vrsqrt.f32 %v776_v26  ;;  %v728_v8 = vmax.f32 %v696_v5, 0.0  ;;  %v614_v40 = vmul.f32 0.03125, %v560_v60  ;;  %1012 = vadd.xlane.f32.xlu0 %v960_v38  ;;  %v760_v38 = vsub.f32 %v1718_v63, %v2010_v28 }
 0x214   :  { %v727_v44 = vmax.f32 %v695_v6, 0.0  ;;  %1459 = vrsqrt.f32 %v775_v32  ;;  %v613_v46 = vmul.f32 0.03125, %v558_v37  ;;  %v741_v55 = vsub.f32 %v1709_v57, %v2031_v24 }
 0x215   :  { %v792_v34 = vadd.f32 1e-05, %v728_v8  ;;  %v678_v12 = vsub.f32 %v614_v40, %v646_v39 }
 0x216   :  { %v791_v62 = vadd.f32 1e-05, %v727_v44  ;;  %v677_v41 = vsub.f32 %v613_v46, %v645_v51  ;;  %v592_v0 = vpop.xlane.xlu1 %591 }
 0x217   :  { %v590_v23 = vpop.xlane.xlu0 %589  ;;  %1461 = vrsqrt.f32 %v792_v34  ;;  %v710_v54 = vmax.f32 %v678_v12, 0.0  ;;  %v630_v45 = vmul.f32 0.03125, %v592_v0  ;;  %v742_v34 = vsub.f32 %v1721_v1, %v2027_v31 }
 0x218   :  { %v629_v27 = vmul.f32 0.03125, %v590_v23  ;;  %1463 = vrsqrt.f32 %v791_v62  ;;  %v709_v52 = vmax.f32 %v677_v41, 0.0 }
 0x219   :  { %v774_v3 = vadd.f32 1e-05, %v710_v54  ;;  %v694_v10 = vsub.f32 %v630_v45, %v662_v36 }
 0x21a   :  { %v693_v43 = vsub.f32 %v629_v27, %v661_v29  ;;  %v773_v58 = vadd.f32 1e-05, %v709_v52  ;;  %v444_v4 = vpop.xlane.xlu1 %443  ;;  %v758_v27 = vsub.f32 %v1724_v2, %v2037_v7 }
 0x21b   :  { %v442_v30 = vpop.xlane.xlu0 %441  ;;  %1465 = vrsqrt.f32 %v774_v3  ;;  %v726_v35 = vmax.f32 %v694_v10, 0.0  ;;  %v2070_v14 = vmul.f32 0.03125, %v444_v4  ;;  %v757_v10 = vsub.f32 %v1712_v59, %v2039_v50 }
 0x21c   :  { %v725_v16 = vmax.f32 %v693_v43, 0.0  ;;  %1467 = vrsqrt.f32 %v773_v58  ;;  %v2075_v54 = vmul.f32 0.03125, %v442_v30 }
 0x21d   :  { %v1458_v49 = vpop.eup %1457  ;;  %v790_v25 = vadd.f32 1e-05, %v726_v35  ;;  %v652_v43 = vmul.f32 %v2070_v14, %v2070_v14 }
 0x21e   :  { %v789_v26 = vadd.f32 1e-05, %v725_v16  ;;  %v1460_v32 = vpop.eup %1459  ;;  %v2052_v5 = vpop.xlane.xlu1 %475  ;;  %v840_v39 = vmul.f32 %v1458_v49, %v744_v33  ;;  %v651_v59 = vmul.f32 %v2075_v54, %v2075_v54 }
 0x21f   :  { %v2054_v6 = vpop.xlane.xlu0 %473  ;;  %1469 = vrsqrt.f32 %v790_v25  ;;  %v839_v60 = vmul.f32 %v1460_v32, %v743_v42 }
 0x220   :  { %1471 = vrsqrt.f32 %v789_v26  ;;  %v877_v61 = vmul.f32 %v1900_v18, %v840_v39 }
 0x221   :  { %v1462_v20 = vpop.eup %1461  ;;  %v876_v40 = vmul.f32 %v1900_v18, %v839_v60 }
 0x222   :  { %v1464_v47 = vpop.eup %1463  ;;  %v440_v37 = vpop.xlane.xlu1 %439  ;;  %v914_v44 = vadd.f32 %v1902_v48, %v877_v61  ;;  %v856_v51 = vmul.f32 %v1462_v20, %v760_v38 }
 0x223   :  { %v438_v8 = vpop.xlane.xlu0 %437  ;;  %v855_v46 = vmul.f32 %v1464_v47, %v759_v53  ;;  %v913_v28 = vadd.f32 %v1902_v48, %v876_v40  ;;  %v2086_v58 = vmul.f32 0.03125, %v440_v37 }
 0x224   :  { %v951_v63 = vmul.f32 %v1909_v56, %v914_v44  ;;  %v893_v62 = vmul.f32 %v1900_v18, %v856_v51  ;;  %v2088_v4 = vmul.f32 0.03125, %v438_v8 }
 0x225   :  { %v1466_v12 = vpop.eup %1465  ;;  %v950_v41 = vmul.f32 %v1909_v56, %v913_v28  ;;  %v892_v31 = vmul.f32 %v1900_v18, %v855_v46  ;;  %v650_v60 = vmul.f32 %v2086_v58, %v2086_v58 }
 0x226   :  { %v1468_v36 = vpop.eup %1467  ;;  %v472_v29 = vpop.xlane.xlu1 %471  ;;  %994 = vadd.xlane.f32.xlu1 %v951_v63  ;;  %v930_v1 = vadd.f32 %v1902_v48, %v893_v62  ;;  %v838_v23 = vmul.f32 %v1466_v12, %v742_v34  ;;  %v649_v53 = vmul.f32 %v2088_v4, %v2088_v4 }
 0x227   :  { %v470_v0 = vpop.xlane.xlu0 %469  ;;  %v837_v45 = vmul.f32 %v1468_v36, %v741_v55  ;;  %992 = vadd.xlane.f32.xlu0 %v950_v41  ;;  %v929_v24 = vadd.f32 %v1902_v48, %v892_v31  ;;  %v2103_v47 = vmul.f32 0.03125, %v472_v29  ;;  %v2115_v31 = vmul.f32 0.03125, %v2054_v6 }
 0x228   :  { %v967_v57 = vmul.f32 %v1909_v56, %v930_v1  ;;  %v875_v52 = vmul.f32 %v1900_v18, %v838_v23  ;;  %v2107_v28 = vmul.f32 0.03125, %v470_v0  ;;  %v2112_v1 = vmul.f32 0.03125, %v2052_v5 }
 0x229   :  { %v1470_v3 = vpop.eup %1469  ;;  %v966_v7 = vmul.f32 %v1909_v56, %v929_v24  ;;  %v874_v33 = vmul.f32 %v1900_v18, %v837_v45  ;;  %v666_v23 = vmul.f32 %v2103_v47, %v2103_v47 }
 0x22a   :  { %v1472_v30 = vpop.eup %1471  ;;  %v572_v2 = vpop.xlane.xlu1 %571  ;;  %1026 = vadd.xlane.f32.xlu1 %v967_v57  ;;  %v912_v16 = vadd.f32 %v1902_v48, %v875_v52  ;;  %v854_v49 = vmul.f32 %v1470_v3, %v758_v27  ;;  %v665_v3 = vmul.f32 %v2107_v28, %v2107_v28 }
 0x22b   :  { %v570_v35 = vpop.xlane.xlu0 %569  ;;  %v620_v50 = vmul.f32 0.03125, %v572_v2  ;;  %v853_v25 = vmul.f32 %v1472_v30, %v757_v10  ;;  %1024 = vadd.xlane.f32.xlu0 %v966_v7  ;;  %v911_v32 = vadd.f32 %v1902_v48, %v874_v33  ;;  %v668_v30 = vmul.f32 %v2112_v1, %v2112_v1 }
 0x22c   :  { %v619_v42 = vmul.f32 0.03125, %v570_v35  ;;  %v949_v26 = vmul.f32 %v1909_v56, %v912_v16  ;;  %v891_v39 = vmul.f32 %v1900_v18, %v854_v49  ;;  %v667_v2 = vmul.f32 %v2115_v31, %v2115_v31 }
 0x22d   :  { %v684_v38 = vsub.f32 %v620_v50, %v652_v43  ;;  %v890_v20 = vmul.f32 %v1900_v18, %v853_v25  ;;  %v948_v8 = vmul.f32 %v1909_v56, %v911_v32 }
 0x22e   :  { %v683_v61 = vsub.f32 %v619_v42, %v651_v59  ;;  %v568_v37 = vpop.xlane.xlu1 %567  ;;  %990 = vadd.xlane.f32.xlu1 %v949_v26  ;;  %v928_v40 = vadd.f32 %v1902_v48, %v891_v39 }
 0x22f   :  { %v566_v44 = vpop.xlane.xlu0 %565  ;;  %v716_v51 = vmax.f32 %v684_v38, 0.0  ;;  %v618_v34 = vmul.f32 0.03125, %v568_v37  ;;  %988 = vadd.xlane.f32.xlu0 %v948_v8  ;;  %v927_v12 = vadd.f32 %v1902_v48, %v890_v20  ;;  %v748_v38 = vsub.f32 %v1749_v17, %v2070_v14 }
 0x230   :  { %v715_v46 = vmax.f32 %v683_v61, 0.0  ;;  %v617_v63 = vmul.f32 0.03125, %v566_v44  ;;  %v965_v62 = vmul.f32 %v1909_v56, %v928_v40  ;;  %v747_v20 = vsub.f32 %v1737_v9, %v2075_v54 }
 0x231   :  { %v780_v55 = vadd.f32 1e-05, %v716_v51  ;;  %v682_v29 = vsub.f32 %v618_v34, %v650_v60  ;;  %v964_v45 = vmul.f32 %v1909_v56, %v927_v12  ;;  %v746_v51 = vsub.f32 %v1755_v21, %v2086_v58 }
 0x232   :  { %v779_v36 = vadd.f32 1e-05, %v715_v46  ;;  %v681_v41 = vsub.f32 %v617_v63, %v649_v53  ;;  %v600_v0 = vpop.xlane.xlu1 %599  ;;  %1022 = vadd.xlane.f32.xlu1 %v965_v62  ;;  %v745_v17 = vsub.f32 %v1743_v13, %v2088_v4  ;;  %v761_v13 = vsub.f32 %v1746_v15, %v2107_v28 }
 0x233   :  { %v598_v27 = vpop.xlane.xlu0 %597  ;;  %1473 = vrsqrt.f32 %v780_v55  ;;  %v714_v57 = vmax.f32 %v682_v29, 0.0  ;;  %v634_v52 = vmul.f32 0.03125, %v600_v0  ;;  %1020 = vadd.xlane.f32.xlu0 %v964_v45  ;;  %v762_v55 = vsub.f32 %v1758_v22, %v2103_v47 }
 0x234   :  { %v713_v24 = vmax.f32 %v681_v41, 0.0  ;;  %1475 = vrsqrt.f32 %v779_v36  ;;  %v633_v5 = vmul.f32 0.03125, %v598_v27  ;;  %v764_v45 = vsub.f32 %v1752_v19, %v2112_v1 }
 0x235   :  { %v778_v6 = vadd.f32 1e-05, %v714_v57  ;;  %v698_v43 = vsub.f32 %v634_v52, %v666_v23  ;;  %v763_v57 = vsub.f32 %v1740_v11, %v2115_v31 }
 0x236   :  { %v777_v10 = vadd.f32 1e-05, %v713_v24  ;;  %v697_v7 = vsub.f32 %v633_v5, %v665_v3  ;;  %v604_v35 = vpop.xlane.xlu1 %603 }
 0x237   :  { %v602_v16 = vpop.xlane.xlu0 %601  ;;  %1477 = vrsqrt.f32 %v778_v6  ;;  %v730_v33 = vmax.f32 %v698_v43, 0.0  ;;  %v636_v49 = vmul.f32 0.03125, %v604_v35 }
 0x238   :  { %v635_v59 = vmul.f32 0.03125, %v602_v16  ;;  %1479 = vrsqrt.f32 %v777_v10  ;;  %v729_v50 = vmax.f32 %v697_v7, 0.0 }
 0x239   :  { %v794_v42 = vadd.f32 1e-05, %v730_v33  ;;  %v700_v25 = vsub.f32 %v636_v49, %v668_v30 }
 0x23a   :  { %v699_v26 = vsub.f32 %v635_v59, %v667_v2  ;;  %v793_v32 = vadd.f32 1e-05, %v729_v50 }
 0x23b   :  { %1481 = vrsqrt.f32 %v794_v42  ;;  %v732_v39 = vmax.f32 %v700_v25, 0.0 }
 0x23c   :  { %v731_v60 = vmax.f32 %v699_v26, 0.0  ;;  %1483 = vrsqrt.f32 %v793_v32 }
 0x23d   :  { %v1474_v61 = vpop.eup %1473  ;;  %v796_v53 = vadd.f32 1e-05, %v732_v39 }
 0x23e   :  { %v795_v37 = vadd.f32 1e-05, %v731_v60  ;;  %v1476_v8 = vpop.eup %1475  ;;  %v844_v44 = vmul.f32 %v1474_v61, %v748_v38 }
 0x23f   :  { %1485 = vrsqrt.f32 %v796_v53  ;;  %v843_v40 = vmul.f32 %v1476_v8, %v747_v20  ;;  %v1068_v53 = vlaneseq }
 0x240   :  { %1487 = vrsqrt.f32 %v795_v37  ;;  %v881_v46 = vmul.f32 %v1900_v18, %v844_v44 }
 0x241   :  { %v1478_v34 = vpop.eup %1477  ;;  %v880_v14 = vmul.f32 %v1900_v18, %v843_v40  ;;  %v1069_v8 = vand.u32 127, %v1068_v53 }
 0x242   :  { %v1480_v63 = vpop.eup %1479  ;;  %v918_v9 = vadd.f32 %v1902_v48, %v881_v46  ;;  %v842_v54 = vmul.f32 %v1478_v34, %v746_v51  ;;  %v1071_v46 = vshrl.u32 %v1068_v53, 7 }
 0x243   :  { %v917_v62 = vadd.f32 %v1902_v48, %v880_v14  ;;  %v841_v12 = vmul.f32 %v1480_v63, %v745_v17  ;;  %v1074_v40 = vadd.s32 4294967288, %v1069_v8 }
 0x244   :  { %v955_v21 = vmul.f32 %v1909_v56, %v918_v9  ;;  %v879_v58 = vmul.f32 %v1900_v18, %v842_v54  ;;  %v2184_v17 = vsub.s32 %v1069_v8, %v1071_v46 }
 0x245   :  { %v1482_v36 = vpop.eup %1481  ;;  %v954_v4 = vmul.f32 %v1909_v56, %v917_v62  ;;  %v878_v29 = vmul.f32 %v1900_v18, %v841_v12  ;;  %v2182_v34 = vsub.s32 %v1074_v40, %v1071_v46 }
 0x246   :  { %v1484_v41 = vpop.eup %1483  ;;  %1002 = vadd.xlane.f32.xlu1 %v955_v21  ;;  %v916_v23 = vadd.f32 %v1902_v48, %v879_v58  ;;  %v858_v0 = vmul.f32 %v1482_v36, %v762_v55 }
 0x247   :  { %1000 = vadd.xlane.f32.xlu0 %v954_v4  ;;  %v915_v22 = vadd.f32 %v1902_v48, %v878_v29  ;;  %v857_v47 = vmul.f32 %v1484_v41, %v761_v13 }
 0x248   :  { %v953_v27 = vmul.f32 %v1909_v56, %v916_v23  ;;  %v895_v15 = vmul.f32 %v1900_v18, %v858_v0 }
 0x249   :  { %v1486_v28 = vpop.eup %1485  ;;  %v952_v24 = vmul.f32 %v1909_v56, %v915_v22  ;;  %v894_v52 = vmul.f32 %v1900_v18, %v857_v47 }
 0x24a   :  { %v1488_v3 = vpop.eup %1487  ;;  %998 = vadd.xlane.f32.xlu1 %v953_v27  ;;  %v932_v5 = vadd.f32 %v1902_v48, %v895_v15  ;;  %v860_v6 = vmul.f32 %v1486_v28, %v764_v45 }
 0x24b   :  { %996 = vadd.xlane.f32.xlu0 %v952_v24  ;;  %v931_v19 = vadd.f32 %v1902_v48, %v894_v52  ;;  %v859_v1 = vmul.f32 %v1488_v3, %v763_v57 }
 0x24c   :  { %v969_v10 = vmul.f32 %v1909_v56, %v932_v5  ;;  %v897_v43 = vmul.f32 %v1900_v18, %v860_v6 }
 0x24d   :  { %v968_v30 = vmul.f32 %v1909_v56, %v931_v19  ;;  %v896_v11 = vmul.f32 %v1900_v18, %v859_v1 }
 0x24e   :  { %1030 = vadd.xlane.f32.xlu1 %v969_v10  ;;  %v934_v31 = vadd.f32 %v1902_v48, %v897_v43 }
 0x24f   :  { %1028 = vadd.xlane.f32.xlu0 %v968_v30  ;;  %v933_v2 = vadd.f32 %v1902_v48, %v896_v11 }
 0x250   :  { %v971_v7 = vmul.f32 %v1909_v56, %v934_v31 }
 0x251   :  { %v970_v35 = vmul.f32 %v1909_v56, %v933_v2 }
 0x252   :  { %1034 = vadd.xlane.f32.xlu1 %v971_v7 }
 0x253   :  { %1032 = vadd.xlane.f32.xlu0 %v970_v35 }
 0x26f   :  { %v977_v33 = vpop.xlane.xlu0 %976 }
 0x270   :  { %v1084_v21 = vrot.slane %v977_v33, %v2184_v17 }
 0x273   :  { %v979_v16 = vpop.xlane.xlu1 %978 }
 0x274   :  { %v2168_v59 = vpop.xlane.xlu0 %1008  ;;  %v1088_v62 = vrot.slane %v979_v16, %v2182_v34 }
 0x275   :  { %v1156_v5 = vrot.slane %v2168_v59, %v2184_v17 }
 0x276   :  { %v1089_v13 = vsel %vm1079_vm0, %v1088_v62, %v1084_v21 }
 0x277   :  { %v2166_v49 = vpop.xlane.xlu1 %1010 }
 0x278   :  { %v1160_v6 = vrot.slane %v2166_v49, %v2182_v34 }
 0x27b   :  { %v975_v50 = vpop.xlane.xlu1 %974 }
 0x27c   :  { %v973_v18 = vpop.xlane.xlu0 %972  ;;  %v1078_v9 = vrot.slane %v975_v50, %v2182_v34 }
 0x27d   :  { %v1073_v54 = vrot.slane %v973_v18, %v2184_v17 }
 0x27f   :  { %v1007_v42 = vpop.xlane.xlu1 %1006  ;;  %v1080_v58 = vsel %vm1079_vm0, %v1078_v9, %v1073_v54 }
 0x280   :  { %v1005_v25 = vpop.xlane.xlu0 %1004  ;;  %v1151_v0 = vrot.slane %v1007_v42, %v2182_v34  ;;  %v1217_v27 = vsel %vm1216_vm1, %v1089_v13, %v1080_v58  ;;  %v1161_v42 = vsel %vm1079_vm0, %v1160_v6, %v1156_v5 }
 0x281   :  { %v1147_v22 = vrot.slane %v1005_v25, %v2184_v17 }
 0x283   :  { %v1152_v19 = vsel %vm1079_vm0, %v1151_v0, %v1147_v22 }
 0x293   :  { %v987_v26 = vpop.xlane.xlu1 %986 }
 0x294   :  { %v985_v32 = vpop.xlane.xlu0 %984  ;;  %v1106_v47 = vrot.slane %v987_v26, %v2182_v34  ;;  %v1230_v26 = vsel %vm1216_vm1, %v1161_v42, %v1152_v19 }
 0x295   :  { %v1102_v45 = vrot.slane %v985_v32, %v2184_v17 }
 0x297   :  { %v2170_v39 = vpop.xlane.xlu1 %1018  ;;  %v1107_v1 = vsel %vm1079_vm0, %v1106_v47, %v1102_v45 }
 0x298   :  { %v2172_v48 = vpop.xlane.xlu0 %1016  ;;  %v1178_v10 = vrot.slane %v2170_v39, %v2182_v34 }
 0x299   :  { %v1174_v31 = vrot.slane %v2172_v48, %v2184_v17 }
 0x29b   :  { %v983_v60 = vpop.xlane.xlu1 %982  ;;  %v1179_v39 = vsel %vm1079_vm0, %v1178_v10, %v1174_v31 }
 0x29c   :  { %v981_v56 = vpop.xlane.xlu0 %980  ;;  %v1097_v12 = vrot.slane %v983_v60, %v2182_v34 }
 0x29d   :  { %v1093_v55 = vrot.slane %v981_v56, %v2184_v17 }
 0x29f   :  { %v1015_v38 = vpop.xlane.xlu1 %1014  ;;  %v1098_v4 = vsel %vm1079_vm0, %v1097_v12, %v1093_v55 }
 0x2a0   :  { %v1013_v61 = vpop.xlane.xlu0 %1012  ;;  %v1219_v15 = vsel %vm1218_vm2, %v1098_v4, %v1217_v27  ;;  %v1169_v28 = vrot.slane %v1015_v38, %v2182_v34 }
 0x2a1   :  { %v1165_v57 = vrot.slane %v1013_v61, %v2184_v17  ;;  %v1221_v11 = vsel %vm1220_vm3, %v1107_v1, %v1219_v15 }
 0x2a3   :  { %v1170_v2 = vsel %vm1079_vm0, %v1169_v28, %v1165_v57 }
 0x2a4   :  { %v1231_v48 = vsel %vm1218_vm2, %v1170_v2, %v1230_v26 }
 0x2a5   :  { %v1232_v9 = vsel %vm1220_vm3, %v1179_v39, %v1231_v48 }
 0x2b3   :  { %v2174_v20 = vpop.xlane.xlu1 %994 }
 0x2b4   :  { %v2176_v37 = vpop.xlane.xlu0 %992  ;;  %v1124_v43 = vrot.slane %v2174_v20, %v2182_v34 }
 0x2b5   :  { %v1120_v30 = vrot.slane %v2176_v37, %v2184_v17 }
 0x2b7   :  { %v2178_v44 = vpop.xlane.xlu1 %1026  ;;  %v1125_v32 = vsel %vm1079_vm0, %v1124_v43, %v1120_v30 }
 0x2b8   :  { %v2180_v51 = vpop.xlane.xlu0 %1024  ;;  %v1196_v40 = vrot.slane %v2178_v44, %v2182_v34 }
 0x2b9   :  { %v1192_v46 = vrot.slane %v2180_v51, %v2184_v17 }
 0x2bb   :  { %v991_v14 = vpop.xlane.xlu1 %990  ;;  %v1197_v58 = vsel %vm1079_vm0, %v1196_v40, %v1192_v46 }
 0x2bc   :  { %v989_v63 = vpop.xlane.xlu0 %988  ;;  %v1115_v29 = vrot.slane %v991_v14, %v2182_v34 }
 0x2bd   :  { %v1111_v41 = vrot.slane %v989_v63, %v2184_v17 }
 0x2bf   :  { %v1023_v36 = vpop.xlane.xlu1 %1022  ;;  %v1116_v52 = vsel %vm1079_vm0, %v1115_v29, %v1111_v41 }
 0x2c0   :  { %v1021_v23 = vpop.xlane.xlu0 %1020  ;;  %v1223_v7 = vsel %vm1222_vm4, %v1116_v52, %v1221_v11  ;;  %v1187_v35 = vrot.slane %v1023_v36, %v2182_v34 }
 0x2c1   :  { %v1183_v33 = vrot.slane %v1021_v23, %v2184_v17  ;;  %v1225_v38 = vsel %vm1224_vm5, %v1125_v32, %v1223_v7  ;;  %v1304_v23 = vld [vmem:[#allocation7 + $0x4] ss:$0 sm:$0xff] }
 0x2c3   :  { %v1188_v61 = vsel %vm1079_vm0, %v1187_v35, %v1183_v33 }
 0x2c4   :  { %v1233_v62 = vsel %vm1222_vm4, %v1188_v61, %v1232_v9 }
 0x2c5   :  { %v1234_v36 = vsel %vm1224_vm5, %v1197_v58, %v1233_v62 }
 0x2d3   :  { %v1003_v24 = vpop.xlane.xlu1 %1002 }
 0x2d4   :  { %v1001_v3 = vpop.xlane.xlu0 %1000  ;;  %v1142_v49 = vrot.slane %v1003_v24, %v2182_v34 }
 0x2d5   :  { %v1138_v59 = vrot.slane %v1001_v3, %v2184_v17 }
 0x2d7   :  { %v999_v16 = vpop.xlane.xlu1 %998  ;;  %v1143_v37 = vsel %vm1079_vm0, %v1142_v49, %v1138_v59 }
 0x2d8   :  { %v1133_v50 = vrot.slane %v999_v16, %v2182_v34  ;;  %v997_v18 = vpop.xlane.xlu0 %996 }
 0x2d9   :  { %v1129_v25 = vrot.slane %v997_v18, %v2184_v17 }
 0x2db   :  { %v1134_v60 = vsel %vm1079_vm0, %v1133_v50, %v1129_v25  ;;  %v1031_v56 = vpop.xlane.xlu1 %1030 }
 0x2dc   :  { %v1205_v20 = vrot.slane %v1031_v56, %v2182_v34  ;;  %v1029_v53 = vpop.xlane.xlu0 %1028  ;;  %v1227_v8 = vsel %vm1226_vm6, %v1134_v60, %v1225_v38 }
 0x2dd   :  { %v1201_v14 = vrot.slane %v1029_v53, %v2184_v17  ;;  %v1229_v63 = vsel %vm1228_vm7, %v1143_v37, %v1227_v8 }
 0x2de   :  { %v1240_v54 = vsel %vm1239_vm8, %v1229_v63, 0.0 }
 0x2df   :  { %1241 = vadd.xlane.f32.xlu0 %v1240_v54  ;;  %v1035_v12 = vpop.xlane.xlu1 %1034  ;;  %v1206_v55 = vsel %vm1079_vm0, %v1205_v20, %v1201_v14 }
 0x2e0   :  { %v1214_v21 = vrot.slane %v1035_v12, %v2182_v34  ;;  %v1033_v44 = vpop.xlane.xlu0 %1032  ;;  %v1235_v4 = vsel %vm1226_vm6, %v1206_v55, %v1234_v36 }
 0x2e1   :  { %v1210_v51 = vrot.slane %v1033_v44, %v2184_v17 }
 0x2e3   :  { %v1215_v13 = vsel %vm1079_vm0, %v1214_v21, %v1210_v51 }
 0x2e4   :  { %v1236_v29 = vsel %vm1228_vm7, %v1215_v13, %v1235_v4 }
 0x2e5   :  { %v1243_v41 = vsel %vm1239_vm8, %v1236_v29, 0.0 }
 0x2e6   :  { %1244 = vadd.xlane.f32.xlu1 %v1243_v41 }
 0x36c   :  { %v1242_v0 = vpop.xlane.xlu0 %1241 }
 0x36d   :  { %v1247_v22 = vmul.f32 0.0625, %v1242_v0 }
 0x36f   :  { %v1254_v34 = vadd.f32 %v1304_v23, %v1247_v22 }
 0x371   :  { %1256 = vst [vmem:[#allocation8] sm:$0xff] %v1254_v34 }
 0x373   :  { %v1245_v47 = vpop.xlane.xlu1 %1244 }
 0x374   :  { %v1248_v17 = vmul.f32 0.0625, %v1245_v47 }
 0x376   :  { %v1255_v45 = vadd.f32 %v1304_v23, %v1248_v17 }
 0x378   :  { %1257 = vst [vmem:[#allocation8 + $0x8] sm:$0xff] %v1255_v45 }
 0x379   :  { %1566 = shalt.err (!%p1563_p0)
}
 0x37a   :  { %s1567_s25 = scalar_lea.hbm %s2273_s3, 256 }
 0x37b   :  { %p1568_p1 = scmp.ne.s32.totalorder %s2273_s3, %s1567_s25  ;;  %p1571_p2 = scmp.lt.u32.totalorder %s1567_s25, %s2273_s3 }
 0x37d   :  { %p1573_p3 = pnand %p1571_p2, %p1568_p1 }
 0x37f   :  { %1576 = shalt.err (!%p1573_p3)
}
 0x380   :  { %s1589_s30 = smov 128   ;;  %s1590_s4 = smov 8  }
 0x381   :  { %1269 = dma.vmem_to_hbm [thread:$0]  %s1264_s21, 256, %s2273_s3, [#allocation4], %s1589_s30, %s1589_s30, %s1590_s4  }
 0x382   :  { %1581 = dma.done.wait [#allocation4], 256  }
 0x383   :  { %1582 = vsyncadd [#allocation4], 4294967040 }
 0x384   :  { %1273 = vsyncpa [#allocation3], 1 }
 0x385   :  { %1274 = vsyncpa [#allocation6], 1 }
 0x386   :  { %1275 = vsyncpa [#allocation4], 1 }

</bundles_post_ra>
